<compile_context>
chip_gen: v7x
topology: tpu7x:2x2x1
jax: 0.10.0
libtpu: 0.0.40
codegen_flags: <defaults>
</compile_context>

<pallas_src>
import functools

import jax
import jax.numpy as jnp
from jax import lax
from jax.experimental import pallas as pl
from jax.experimental.pallas import tpu as pltpu

_LANE = 128
_NEG_BIG = -1e30  # used to pad b2's class lanes; exp() underflows to 0


def _rup(x, m):
    return ((x + m - 1) // m) * m


# ---------------------------------------------------------------------------
# Fused Pallas kernel: layer1 + hidden layers + layer2 + log_softmax
# ---------------------------------------------------------------------------
def _adagnn_fused_kernel(l_ref, x_ref, phi1_ref, w1_ref, b1_ref,
                         hphi_ref, phi2_ref, w2_ref, b2_ref, o_ref,
                         *, n_hidden, unroll_hidden):
    # L stays resident in VMEM for every layer (single-buffered, no grid).
    l = l_ref[...]                       # [Np, Np]   f32 or bf16
    x = x_ref[...]                       # [Np, Fin_p] f32
    mx_dt = l.dtype                      # matmul-operand dtype for L@* dots

    # ---- layer 1 (with weight) + ReLU -------------------------------------
    lx = jnp.dot(l, x.astype(mx_dt), preferred_element_type=jnp.float32)
    e = x - lx * phi1_ref[...]           # phi1 [1, Fin_p] broadcasts over rows
    h = jnp.dot(e, w1_ref[...], preferred_element_type=jnp.float32) + b1_ref[...]
    h = jnp.maximum(h, 0.0)
    # dropout(training=False) -> identity
    # TODO(synk): training-mode dropout (pltpu.prng_*) not implemented.

    # ---- hidden layers (no weight, bias=False) -----------------------------
    def one_hidden(li, h):
        phi = hphi_ref[pl.ds(li, 1), :]  # [1, H_p]
        lh = jnp.dot(l, h.astype(mx_dt), preferred_element_type=jnp.float32)
        return h - lh * phi
        # dropout(training=False) -> identity

    if unroll_hidden:
        for li in range(n_hidden):       # small fixed trip count -> unroll
            h = one_hidden(li, h)
    elif n_hidden > 0:
        h = lax.fori_loop(0, n_hidden, one_hidden, h)  # bounded live range

    # ---- layer 2 (with weight) + log_softmax(dim=1) ------------------------
    lh = jnp.dot(l, h.astype(mx_dt), preferred_element_type=jnp.float32)
    e2 = h - lh * phi2_ref[...]
    # Padded W2 columns are zero and padded b2 lanes are -1e30, so padded
    # class lanes of y are exactly -1e30 -> no in-kernel masking needed.
    y = jnp.dot(e2, w2_ref[...], preferred_element_type=jnp.float32) + b2_ref[...]

    m = jnp.max(y, axis=1, keepdims=True)
    z = y - m
    lse = jnp.log(jnp.sum(jnp.exp(z), axis=1, keepdims=True))
    o_ref[...] = z - lse                 # lane-dense [Np, C_p] store


# ---------------------------------------------------------------------------
# Wrapper: pad to lane-dense shapes, single pallas_call, slice padding off
# ---------------------------------------------------------------------------
def adagnn_forward(params, x, l_sym, *, matmul_dtype=jnp.float32):
    """Full AdaGNN forward (eval mode: dropout is identity).

    matmul_dtype: dtype of L and of the L@x / L@h operands (f32 or bf16).
                  Accumulation and all elementwise math stay f32.
    """
    n, nfeat = x.shape
    nhid = params["w1"].shape[1]
    nclass = params["w2"].shape[1]
    hidden_phis = params["hidden_phis"]
    n_hidden = len(hidden_phis)

    # N is both the lane (last) dim of L and the contraction dim of every
    # L@x / L@h matmul -> pad to a full 128-lane multiple.
    # TODO(synk): prefer 256-alignment on v6e/v7x (2x256^2 MXU); 128 also
    #             keeps v5e (4x128^2) fully fed.
    n_p = _rup(n, _LANE)
    fin_p = _rup(nfeat, _LANE)
    nhid_p = _rup(nhid, _LANE)
    ncls_p = _rup(nclass, _LANE)

    f32 = jnp.float32

    def pad2(a, rows, cols):
        a = jnp.asarray(a, f32)
        return jnp.pad(a, ((0, rows - a.shape[0]), (0, cols - a.shape[1])))

    # L resident across all layers; bf16 halves its VMEM footprint and feeds
    # the MXU at full reduced-precision throughput on v6e/v7x.
    l_pad = pad2(l_sym, n_p, n_p).astype(matmul_dtype)
    x_pad = pad2(x, n_p, fin_p)
    phi1 = pad2(jnp.asarray(params["phi1"]).reshape(1, -1), 1, fin_p)
    w1 = pad2(params["w1"], fin_p, nhid_p)
    b1 = pad2(jnp.asarray(params["b1"]).reshape(1, -1), 1, nhid_p)
    if n_hidden > 0:
        hphi = pad2(jnp.stack(hidden_phis), n_hidden, nhid_p)
    else:
        hphi = jnp.zeros((1, nhid_p), f32)   # placeholder, never read
    phi2 = pad2(jnp.asarray(params["phi2"]).reshape(1, -1), 1, nhid_p)
    w2 = pad2(params["w2"], nhid_p, ncls_p)
    # Padded class lanes of b2 carry -1e30 (see kernel comment).
    b2 = jnp.pad(jnp.asarray(params["b2"], f32).reshape(1, -1),
                 ((0, 0), (0, ncls_p - nclass)), constant_values=_NEG_BIG)

    inputs = (l_pad, x_pad, phi1, w1, b1, hphi, phi2, w2, b2)
    out_bytes = n_p * ncls_p * 4
    io_bytes = sum(int(a.size) * a.dtype.itemsize for a in inputs) + out_bytes

    # Single-buffered operands (no grid) + slack for intermediates (lx/e/h).
    vmem_bytes = io_bytes + 4 * n_p * max(fin_p, nhid_p, ncls_p) * 4 + (1 << 20)
    vmem_bytes = max(vmem_bytes, 16 << 20)
    try:
        phys_vmem = int(pltpu.get_tpu_info().vmem_capacity_bytes)
    except Exception:
        phys_vmem = 64 << 20                 # conservative (v7x physical)
    vmem_bytes = min(vmem_bytes, int(phys_vmem * 7 / 8), 100 << 20)

    flops = (2 * n_p * n_p * (fin_p + (n_hidden + 1) * nhid_p)  # L@x / L@h
             + 2 * n_p * fin_p * nhid_p                          # e  @ W1
             + 2 * n_p * nhid_p * ncls_p)                        # e2 @ W2
    cost = pl.CostEstimate(flops=flops,
                           transcendentals=n_p * ncls_p + n_p,
                           bytes_accessed=io_bytes)

    vmem_spec = pl.BlockSpec(memory_space=pltpu.MemorySpace.VMEM)
    kernel = functools.partial(_adagnn_fused_kernel,
                               n_hidden=n_hidden,
                               unroll_hidden=(n_hidden <= 4))

    out_pad = pl.pallas_call(
        kernel,
        out_shape=jax.ShapeDtypeStruct((n_p, ncls_p), jnp.float32),
        in_specs=[vmem_spec] * len(inputs),
        out_specs=vmem_spec,
        compiler_params=pltpu.CompilerParams(vmem_limit_bytes=int(vmem_bytes)),
        cost_estimate=cost,
    )(*inputs)

    return out_pad[:n, :nclass]


# ---------------------------------------------------------------------------
# Pure-JAX reference for a correctness check
# ---------------------------------------------------------------------------
def adagnn_reference(params, x, l_sym):
    def with_w(x, phi, w, b):
        return (x - (l_sym @ x) * phi[None, :]) @ w + b[None, :]

    h = jax.nn.relu(with_w(x, params["phi1"], params["w1"], params["b1"]))
    for phi in params["hidden_phis"]:
        h = h - (l_sym @ h) * phi[None, :]
    y = with_w(h, params["phi2"], params["w2"], params["b2"])
    return jax.nn.log_softmax(y, axis=1)


# ---------------------------------------------------------------------------
# Main
# ---------------------------------------------------------------------------
if __name__ == "__main__":
    # Small, module-consistent shapes.
    N = 16          # number of graph nodes (diag_dimension)
    NFEAT = 8       # input features
    NHID = 32       # hidden features
    NCLASS = 4      # output classes
    NLAYER = 3      # -> nlayer - 2 = 1 hidden (no-weight) layer
    DROPOUT = 0.5   # eval mode -> identity

    key = jax.random.PRNGKey(0)
    keys = jax.random.split(key, 10)

    # Node features.
    x = jax.random.normal(keys[0], (N, NFEAT), dtype=jnp.float32)

    # Symmetric normalized Laplacian  L = I - D^-1/2 A D^-1/2  (dense).
    a = (jax.random.uniform(keys[1], (N, N)) < 0.3).astype(jnp.float32)
    a = jnp.maximum(a, a.T)
    a = a * (1.0 - jnp.eye(N, dtype=jnp.float32)) + jnp.eye(N, dtype=jnp.float32)
    deg = jnp.sum(a, axis=1)
    d_inv_sqrt = 1.0 / jnp.sqrt(deg)
    l_sym = jnp.eye(N, dtype=jnp.float32) - (d_inv_sqrt[:, None] * a * d_inv_sqrt[None, :])

    # Deterministic parameter init (matching the layer shapes of the module).
    def uniform(k, shape, scale):
        return jax.random.uniform(k, shape, jnp.float32, -scale, scale)

    params = {
        # Adagnn_with_weight(diag_dimension, nfeat, nhid)
        "phi1": uniform(keys[2], (NFEAT,), 0.05),
        "w1": uniform(keys[3], (NFEAT, NHID), 1.0 / jnp.sqrt(NHID)),
        "b1": uniform(keys[4], (NHID,), 1.0 / jnp.sqrt(NHID)),
        # (nlayer - 2) x Adagnn_without_weight(nfeat, nhid, nhid, bias=False)
        "hidden_phis": [uniform(keys[5 + i], (NHID,), 0.05)
                        for i in range(NLAYER - 2)],
        # Adagnn_with_weight(diag_dimension, nhid, nclass)
        "phi2": uniform(keys[7], (NHID,), 0.05),
        "w2": uniform(keys[8], (NHID, NCLASS), 1.0 / jnp.sqrt(NCLASS)),
        "b2": uniform(keys[9], (NCLASS,), 1.0 / jnp.sqrt(NCLASS)),
    }

    ref = adagnn_reference(params, x, l_sym)

    # f32 path: exact-semantics check.
    out = adagnn_forward(params, x, l_sym, matmul_dtype=jnp.float32)
    out = jax.block_until_ready(out)
    assert out.shape == (N, NCLASS)
    assert jnp.allclose(out, ref, atol=1e-4, rtol=1e-4), "f32 mismatch vs reference"

    # bf16 MXU-operand path (v6e/v7x fast path): looser tolerance vs f32 ref.
    out_bf16 = adagnn_forward(params, x, l_sym, matmul_dtype=jnp.bfloat16)
    out_bf16 = jax.block_until_ready(out_bf16)
    assert out_bf16.shape == (N, NCLASS)
    assert jnp.allclose(out_bf16, ref, atol=5e-2, rtol=5e-2), "bf16 mismatch vs reference"

    print("KERNEL_OK")
</pallas_src>

<mosaic_0001>
module attributes {stable_mosaic.version = 11 : i64} {
  func.func @_adagnn_fused_kernel(%arg0: memref<128x128xf32, #tpu.memory_space<vmem>>, %arg1: memref<128x128xf32, #tpu.memory_space<vmem>>, %arg2: memref<1x128xf32, #tpu.memory_space<vmem>>, %arg3: memref<128x128xf32, #tpu.memory_space<vmem>>, %arg4: memref<1x128xf32, #tpu.memory_space<vmem>>, %arg5: memref<1x128xf32, #tpu.memory_space<vmem>>, %arg6: memref<1x128xf32, #tpu.memory_space<vmem>>, %arg7: memref<128x128xf32, #tpu.memory_space<vmem>>, %arg8: memref<1x128xf32, #tpu.memory_space<vmem>>, %arg9: memref<128x128xf32, #tpu.memory_space<vmem>>) attributes {dimension_semantics = [], scalar_prefetch = 0 : i64, scratch_operands = 0 : i64, tpu.core_type = #tpu.core_type<tc>} {
    %c0 = arith.constant 0 : index
    %c0_0 = arith.constant 0 : index
    %0 = vector.load %arg0[%c0, %c0_0] : memref<128x128xf32, #tpu.memory_space<vmem>>, vector<128x128xf32>
    %c0_1 = arith.constant 0 : index
    %c0_2 = arith.constant 0 : index
    %1 = vector.load %arg1[%c0_1, %c0_2] : memref<128x128xf32, #tpu.memory_space<vmem>>, vector<128x128xf32>
    %cst = arith.constant dense<0.000000e+00> : vector<128x128xf32>
    %2 = tpu.matmul %0, %1, %cst {dimension_numbers = #tpu.dot_dimension_numbers<[1], [0], [0], [1], [0, 0, 1, 1], [], []>} : vector<128x128xf32>, vector<128x128xf32>, vector<128x128xf32> -> vector<128x128xf32>
    %c0_3 = arith.constant 0 : index
    %c0_4 = arith.constant 0 : index
    %3 = vector.load %arg2[%c0_3, %c0_4] : memref<1x128xf32, #tpu.memory_space<vmem>>, vector<1x128xf32>
    %4 = vector.broadcast %3 : vector<1x128xf32> to vector<128x128xf32>
    %5 = arith.mulf %2, %4 : vector<128x128xf32>
    %6 = arith.subf %1, %5 : vector<128x128xf32>
    %c0_5 = arith.constant 0 : index
    %c0_6 = arith.constant 0 : index
    %7 = vector.load %arg3[%c0_5, %c0_6] : memref<128x128xf32, #tpu.memory_space<vmem>>, vector<128x128xf32>
    %cst_7 = arith.constant dense<0.000000e+00> : vector<128x128xf32>
    %8 = tpu.matmul %6, %7, %cst_7 {dimension_numbers = #tpu.dot_dimension_numbers<[1], [0], [0], [1], [0, 0, 1, 1], [], []>} : vector<128x128xf32>, vector<128x128xf32>, vector<128x128xf32> -> vector<128x128xf32>
    %c0_8 = arith.constant 0 : index
    %c0_9 = arith.constant 0 : index
    %9 = vector.load %arg4[%c0_8, %c0_9] : memref<1x128xf32, #tpu.memory_space<vmem>>, vector<1x128xf32>
    %10 = vector.broadcast %9 : vector<1x128xf32> to vector<128x128xf32>
    %11 = arith.addf %8, %10 : vector<128x128xf32>
    %cst_10 = arith.constant 0.000000e+00 : f32
    %12 = vector.broadcast %cst_10 : f32 to vector<128x128xf32>
    %13 = arith.maximumf %11, %12 : vector<128x128xf32>
    %c0_11 = arith.constant 0 : index
    %c0_12 = arith.constant 0 : index
    %14 = vector.load %arg5[%c0_11, %c0_12] : memref<1x128xf32, #tpu.memory_space<vmem>>, vector<1x128xf32>
    %cst_13 = arith.constant dense<0.000000e+00> : vector<128x128xf32>
    %15 = tpu.matmul %0, %13, %cst_13 {dimension_numbers = #tpu.dot_dimension_numbers<[1], [0], [0], [1], [0, 0, 1, 1], [], []>} : vector<128x128xf32>, vector<128x128xf32>, vector<128x128xf32> -> vector<128x128xf32>
    %16 = vector.broadcast %14 : vector<1x128xf32> to vector<128x128xf32>
    %17 = arith.mulf %15, %16 : vector<128x128xf32>
    %18 = arith.subf %13, %17 : vector<128x128xf32>
    %cst_14 = arith.constant dense<0.000000e+00> : vector<128x128xf32>
    %19 = tpu.matmul %0, %18, %cst_14 {dimension_numbers = #tpu.dot_dimension_numbers<[1], [0], [0], [1], [0, 0, 1, 1], [], []>} : vector<128x128xf32>, vector<128x128xf32>, vector<128x128xf32> -> vector<128x128xf32>
    %c0_15 = arith.constant 0 : index
    %c0_16 = arith.constant 0 : index
    %20 = vector.load %arg6[%c0_15, %c0_16] : memref<1x128xf32, #tpu.memory_space<vmem>>, vector<1x128xf32>
    %21 = vector.broadcast %20 : vector<1x128xf32> to vector<128x128xf32>
    %22 = arith.mulf %19, %21 : vector<128x128xf32>
    %23 = arith.subf %18, %22 : vector<128x128xf32>
    %c0_17 = arith.constant 0 : index
    %c0_18 = arith.constant 0 : index
    %24 = vector.load %arg7[%c0_17, %c0_18] : memref<128x128xf32, #tpu.memory_space<vmem>>, vector<128x128xf32>
    %cst_19 = arith.constant dense<0.000000e+00> : vector<128x128xf32>
    %25 = tpu.matmul %23, %24, %cst_19 {dimension_numbers = #tpu.dot_dimension_numbers<[1], [0], [0], [1], [0, 0, 1, 1], [], []>} : vector<128x128xf32>, vector<128x128xf32>, vector<128x128xf32> -> vector<128x128xf32>
    %c0_20 = arith.constant 0 : index
    %c0_21 = arith.constant 0 : index
    %26 = vector.load %arg8[%c0_20, %c0_21] : memref<1x128xf32, #tpu.memory_space<vmem>>, vector<1x128xf32>
    %27 = vector.broadcast %26 : vector<1x128xf32> to vector<128x128xf32>
    %28 = arith.addf %25, %27 : vector<128x128xf32>
    %cst_22 = arith.constant dense<0xFF800000> : vector<128xf32>
    %29 = vector.multi_reduction <maximumf>, %28, %cst_22 [1] : vector<128x128xf32> to vector<128xf32>
    %30 = vector.shape_cast %29 : vector<128xf32> to vector<128x1xf32>
    %31 = vector.broadcast %30 : vector<128x1xf32> to vector<128x128xf32>
    %32 = arith.subf %28, %31 : vector<128x128xf32>
    %33 = math.exp %32 : vector<128x128xf32>
    %cst_23 = arith.constant dense<0.000000e+00> : vector<128xf32>
    %34 = vector.multi_reduction <add>, %33, %cst_23 [1] : vector<128x128xf32> to vector<128xf32>
    %35 = vector.shape_cast %34 : vector<128xf32> to vector<128x1xf32>
    %36 = math.log %35 : vector<128x1xf32>
    %37 = vector.broadcast %36 : vector<128x1xf32> to vector<128x128xf32>
    %38 = arith.subf %32, %37 : vector<128x128xf32>
    %c0_24 = arith.constant 0 : index
    %c0_25 = arith.constant 0 : index
    %39 = vector.load %arg9[%c0_24, %c0_25] : memref<128x128xf32, #tpu.memory_space<vmem>>, vector<128x128xf32>
    tpu.vector_store %arg9[%c0_24, %c0_25], %38 {strides = array<i32>} : memref<128x128xf32, #tpu.memory_space<vmem>>, vector<128x128xf32>,
    return
  }
}

</mosaic_0001>

<bundles_post_ra>
// kernel: tpu_custom_call.1
= control target key start
LH: loop header
LB: loop body
LE: loop exit
PB: predicated region body
PF: predicated region fallthrough
CT: control target
= control target key end

     0   :  { %14 = vsyncpa [#allocation3], 0  ;;  %s2672_s0 = inlined_call_operand.hbm [shape: f32[128,128], index: 0, kind: input, shape index: {}]   ;;  %s2673_s1 = inlined_call_operand.hbm [shape: f32[128,128], index: 1, kind: input, shape index: {}]   ;;  %s2674_s2 = inlined_call_operand.vmem [shape: f32[1,128], index: 2, kind: input, shape index: {}]   ;;  %s2675_s3 = inlined_call_operand.hbm [shape: f32[128,128], index: 3, kind: input, shape index: {}]   ;;  %s2676_s4 = inlined_call_operand.vmem [shape: f32[1,128], index: 4, kind: input, shape index: {}]   ;;  %s2677_s5 = inlined_call_operand.vmem [shape: f32[1,128], index: 5, kind: input, shape index: {}]   ;;  %s2678_s6 = inlined_call_operand.vmem [shape: f32[1,128], index: 6, kind: input, shape index: {}]   ;;  %s2679_s7 = inlined_call_operand.hbm [shape: f32[128,128], index: 7, kind: input, shape index: {}]   ;;  %s2680_s8 = inlined_call_operand.vmem [shape: f32[1,128], index: 8, kind: input, shape index: {}]   ;;  %s2681_s9 = inlined_call_operand.hbm [shape: f32[128,128], index: 9, kind: output, shape index: {}]  }
   0x1   :  { %15 = vsyncpa [#allocation6], 0 }
   0x2   :  { %16 = vsyncpa [#allocation9], 0 }
   0x3   :  { %17 = vsyncpa [#allocation4], 0  ;;  %s2029_s30 = smov [#allocation5]   ;;  %s2030_s11 = smov [#allocation2]  }
   0x4   :  { %s35_s10 = sshll.u32 %s2029_s30, 4  ;;  %s23_s12 = sshll.u32 %s2030_s11, 4  ;;  %s36_s10 = int_to_ptr.vmem [resolvable:$true] %s35_s10  ;;  %s2086_s12 = int_to_ptr.vmem [resolvable:$true] %s23_s12 }
   0x5   :  { %s1911_s15 = scalar_lea.hbm %s2673_s1, 2048 }
   0x6   :  { %p1912_p0 = scmp.ne.s32.totalorder %s2673_s1, %s1911_s15  ;;  %p1915_p1 = scmp.lt.u32.totalorder %s1911_s15, %s2673_s1 }
   0x8   :  { %p1917_p2 = pnand %p1915_p1, %p1912_p0 }
   0xa   :  { %1920 = shalt.err (!%p1917_p2)
}
   0xb   :  { %s1921_s20 = scalar_lea.vmem %s36_s10, 2048  ;;  %p1926_p4 = scmp.lt.s32.totalorder %s36_s10, %s36_s10 }
   0xc   :  { %p1922_p3 = scmp.ne.s32.totalorder %s36_s10, %s1921_s20  ;;  %p1927_p5 = scmp.lt.s32.totalorder %s1921_s20, %s1921_s20 }
   0xe   :  { %p1928_p6 = por %p1927_p5, %p1926_p4 }
  0x10   :  { %p1929_p7 = pnand %p1928_p6, %p1922_p3 }
  0x12   :  { %1932 = shalt.err (!%p1929_p7)
}
  0x13   :  { %s2031_s21 = smov 128   ;;  %s2032_s22 = smov 8  }
  0x14   :  { %41 = dma.hbm_to_vmem [thread:$0]  %s2673_s1, 2048, %s36_s10, [#allocation6], %s2031_s21, %s2031_s21, %s2032_s22  }
  0x15   :  { %s1933_s27 = scalar_lea.hbm %s2672_s0, 2048 }
  0x16   :  { %p1934_p8 = scmp.ne.s32.totalorder %s2672_s0, %s1933_s27  ;;  %p1937_p9 = scmp.lt.u32.totalorder %s1933_s27, %s2672_s0 }
  0x18   :  { %p1939_p10 = pnand %p1937_p9, %p1934_p8 }
  0x1a   :  { %1942 = shalt.err (!%p1939_p10)
}
  0x1b   :  { %s1943_s13 = scalar_lea.vmem %s2086_s12, 2048  ;;  %p1948_p12 = scmp.lt.s32.totalorder %s2086_s12, %s2086_s12 }
  0x1c   :  { %p1944_p11 = scmp.ne.s32.totalorder %s2086_s12, %s1943_s13  ;;  %p1949_p13 = scmp.lt.s32.totalorder %s1943_s13, %s1943_s13 }
  0x1e   :  { %p1950_p0 = por %p1949_p13, %p1948_p12 }
  0x20   :  { %p1951_p1 = pnand %p1950_p0, %p1944_p11 }
  0x22   :  { %1954 = shalt.err (!%p1951_p1)
}
  0x23   :  { %29 = dma.hbm_to_vmem [thread:$0]  %s2672_s0, 2048, %s2086_s12, [#allocation3], %s2031_s21, %s2031_s21, %s2032_s22  }
  0x24   :  { %s2033_s14 = smov [#allocation7]   ;;  %s2034_s16 = smov [#allocation8]  }
  0x25   :  { %s49_s15 = sshll.u32 %s2033_s14, 4  ;;  %s67_s17 = sshll.u32 %s2034_s16, 4  ;;  %s50_s15 = int_to_ptr.vmem [resolvable:$true] %s49_s15  ;;  %s2123_s17 = int_to_ptr.vmem [resolvable:$true] %s67_s17 }
  0x26   :  { %s1955_s20 = scalar_lea.hbm %s2675_s3, 2048 }
  0x27   :  { %p1956_p2 = scmp.ne.s32.totalorder %s2675_s3, %s1955_s20  ;;  %p1959_p3 = scmp.lt.u32.totalorder %s1955_s20, %s2675_s3 }
  0x29   :  { %p1961_p4 = pnand %p1959_p3, %p1956_p2 }
  0x2b   :  { %1964 = shalt.err (!%p1961_p4)
}
  0x2c   :  { %s1965_s0 = scalar_lea.vmem %s50_s15, 2048  ;;  %p1970_p6 = scmp.lt.s32.totalorder %s50_s15, %s50_s15 }
  0x2d   :  { %p1966_p5 = scmp.ne.s32.totalorder %s50_s15, %s1965_s0  ;;  %p1971_p7 = scmp.lt.s32.totalorder %s1965_s0, %s1965_s0 }
  0x2f   :  { %p1972_p8 = por %p1971_p7, %p1970_p6 }
  0x31   :  { %p1973_p9 = pnand %p1972_p8, %p1966_p5 }
  0x33   :  { %1976 = shalt.err (!%p1973_p9)
}
  0x34   :  { %55 = dma.hbm_to_vmem [thread:$0]  %s2675_s3, 2048, %s50_s15, [#allocation6], %s2031_s21, %s2031_s21, %s2032_s22  }
  0x35   :  { %s1977_s30 = scalar_lea.hbm %s2679_s7, 2048 }
  0x36   :  { %p1978_p10 = scmp.ne.s32.totalorder %s2679_s7, %s1977_s30  ;;  %p1981_p11 = scmp.lt.u32.totalorder %s1977_s30, %s2679_s7 }
  0x38   :  { %p1983_p12 = pnand %p1981_p11, %p1978_p10 }
  0x3a   :  { %1986 = shalt.err (!%p1983_p12)
}
  0x3b   :  { %s1987_s14 = scalar_lea.vmem %s2123_s17, 2048  ;;  %p1992_p0 = scmp.lt.s32.totalorder %s2123_s17, %s2123_s17 }
  0x3c   :  { %p1988_p13 = scmp.ne.s32.totalorder %s2123_s17, %s1987_s14  ;;  %p1993_p1 = scmp.lt.s32.totalorder %s1987_s14, %s1987_s14 }
  0x3e   :  { %p1994_p2 = por %p1993_p1, %p1992_p0 }
  0x40   :  { %p1995_p3 = pnand %p1994_p2, %p1988_p13 }
  0x42   :  { %1998 = shalt.err (!%p1995_p3)
}
  0x43   :  { %73 = dma.hbm_to_vmem [thread:$0]  %s2679_s7, 2048, %s2123_s17, [#allocation9], %s2031_s21, %s2031_s21, %s2032_s22  }
  0x44   :  { %2021 = dma.done.wait [#allocation3], 2048  }
  0x45   :  { %2022 = vsyncadd [#allocation3], 4294965248 }
  0x46   :  { %2023 = dma.done.wait [#allocation6], 4096  }
  0x47   :  { %2024 = vsyncadd [#allocation6], 4294963200 }
  0x48   :  { %2025 = dma.done.wait [#allocation9], 2048  }
  0x49   :  { %2026 = vsyncadd [#allocation9], 4294965248  ;;  %v2160_v0 = vld [vmem:[#allocation5] sm:$0xff]  ;;  %v2162_v1 = vld [vmem:[#allocation5 + $0x8] sm:$0xff] }
  0x4a   :  { %v2164_v2 = vld [vmem:[#allocation5 + $0x10] sm:$0xff]  ;;  %v1664_v3 = vpack.c.bf16 %v2162_v1, %v2160_v0  ;;  %v2168_v4 = vld [vmem:[#allocation5 + $0x18] sm:$0xff]  ;;  %v2172_v6 = vld [vmem:[#allocation5 + $0x20] sm:$0xff] }
  0x4b   :  { %v1668_v5 = vpack.c.bf16 %v2168_v4, %v2164_v2  ;;  %v2174_v7 = vld [vmem:[#allocation5 + $0x28] sm:$0xff]  ;;  %v2178_v9 = vld [vmem:[#allocation2] sm:$0xff]  ;;  %v2180_v10 = vld [vmem:[#allocation5 + $0x30] sm:$0xff] }
  0x4c   :  { %1665 = vmatprep.subr.bf16.mxu0 %v1664_v3  ;;  %v1672_v8 = vpack.c.bf16 %v2174_v7, %v2172_v6  ;;  %v2182_v11 = vld [vmem:[#allocation5 + $0x38] sm:$0xff]  ;;  %1416 = vmatprep.mubr.f32.mxu0 %v2178_v9  ;;  %v2187_v13 = vld [vmem:[#allocation5 + $0x40] sm:$0xff]  ;;  %v2189_v14 = vld [vmem:[#allocation5 + $0x48] sm:$0xff] }
  0x4d   :  { %1667 = vmatpush3.bf16.msra.mxu0 %v1664_v3  ;;  %v1676_v12 = vpack.c.bf16 %v2182_v11, %v2180_v10  ;;  %v304_v15 = vld [vmem:[#allocation7] sm:$0xff]  ;;  %v305_v16 = vld [vmem:[#allocation7 + $0x8] sm:$0xff]  ;;  %v306_v17 = vld [vmem:[#allocation7 + $0x10] sm:$0xff]  ;;  %v1680_v21 = vpack.c.bf16 %v2189_v14, %v2187_v13 }
  0x4e   :  { %1669 = vmatprep.subr.bf16.mxu0 %v1668_v5  ;;  %v307_v18 = vld [vmem:[#allocation7 + $0x18] sm:$0xff]  ;;  %v1696_v19 = vpack.c.bf16 %v305_v16, %v304_v15  ;;  %v308_v22 = vld [vmem:[#allocation7 + $0x20] sm:$0xff]  ;;  %v309_v23 = vld [vmem:[#allocation7 + $0x28] sm:$0xff] }
  0x4f   :  { %v1700_v20 = vpack.c.bf16 %v307_v18, %v306_v17  ;;  %v2193_v24 = vld [vmem:[#allocation5 + $0x50] sm:$0xff]  ;;  %v2195_v25 = vld [vmem:[#allocation5 + $0x58] sm:$0xff]  ;;  %v1704_v26 = vpack.c.bf16 %v309_v23, %v308_v22  ;;  %v2199_v30 = vld [vmem:[#allocation5 + $0x60] sm:$0xff] }
  0x50   :  { %1697 = vmatprep.subr.bf16.mxu1 %v1696_v19  ;;  %v1684_v27 = vpack.c.bf16 %v2195_v25, %v2193_v24  ;;  %v310_v28 = vld [vmem:[#allocation7 + $0x30] sm:$0xff]  ;;  %v311_v29 = vld [vmem:[#allocation7 + $0x38] sm:$0xff]  ;;  %v2201_v31 = vld [vmem:[#allocation5 + $0x68] sm:$0xff] }
  0x51   :  { %1671 = vmatpush3.bf16.msra.mxu0 %v1668_v5  ;;  %1699 = vmatpush3.bf16.msra.mxu1 %v1696_v19  ;;  %v1708_v32 = vpack.c.bf16 %v311_v29, %v310_v28  ;;  %v1688_v33 = vpack.c.bf16 %v2201_v31, %v2199_v30  ;;  %v312_v34 = vld [vmem:[#allocation7 + $0x40] sm:$0xff]  ;;  %v313_v35 = vld [vmem:[#allocation7 + $0x48] sm:$0xff]  ;;  %v2205_v36 = vld [vmem:[#allocation5 + $0x70] sm:$0xff] }
  0x52   :  { %1673 = vmatprep.subr.bf16.mxu0 %v1672_v8  ;;  %1701 = vmatprep.subr.bf16.mxu1 %v1700_v20  ;;  %v2207_v37 = vld [vmem:[#allocation5 + $0x78] sm:$0xff]  ;;  %v1712_v38 = vpack.c.bf16 %v313_v35, %v312_v34  ;;  %v314_v40 = vld [vmem:[#allocation7 + $0x50] sm:$0xff]  ;;  %v316_v43 = vld [vmem:[#allocation7 + $0x60] sm:$0xff] }
  0x53   :  { %v1692_v39 = vpack.c.bf16 %v2207_v37, %v2205_v36  ;;  %v315_v41 = vld [vmem:[#allocation7 + $0x58] sm:$0xff]  ;;  %v317_v44 = vld [vmem:[#allocation7 + $0x68] sm:$0xff]  ;;  %v2213_v47 = vld [vmem:[#allocation2 + $0x10] sm:$0xff] }
  0x54   :  { %v1716_v42 = vpack.c.bf16 %v315_v41, %v314_v40  ;;  %v2211_v45 = vld [vmem:[#allocation2 + $0x8] sm:$0xff]  ;;  %v1720_v46 = vpack.c.bf16 %v317_v44, %v316_v43  ;;  %v2217_v48 = vld [vmem:[#allocation2 + $0x18] sm:$0xff]  ;;  %v2219_v49 = vld [vmem:[#allocation2 + $0x20] sm:$0xff] }
  0x55   :  { %1675 = vmatpush3.bf16.msra.mxu0 %v1672_v8  ;;  %1703 = vmatpush3.bf16.msra.mxu1 %v1700_v20  ;;  %v2223_v50 = vld [vmem:[#allocation2 + $0x28] sm:$0xff]  ;;  %v2225_v51 = vld [vmem:[#allocation2 + $0x30] sm:$0xff]  ;;  %v2229_v52 = vld [vmem:[#allocation2 + $0x38] sm:$0xff] }
  0x56   :  { %1677 = vmatprep.subr.bf16.mxu0 %v1676_v12  ;;  %1705 = vmatprep.subr.bf16.mxu1 %v1704_v26  ;;  %v2231_v53 = vld [vmem:[#allocation2 + $0x40] sm:$0xff]  ;;  %v2235_v54 = vld [vmem:[#allocation2 + $0x48] sm:$0xff]  ;;  %v2237_v55 = vld [vmem:[#allocation2 + $0x50] sm:$0xff] }
  0x57   :  { %v2241_v56 = vld [vmem:[#allocation2 + $0x58] sm:$0xff]  ;;  %v2243_v57 = vld [vmem:[#allocation2 + $0x60] sm:$0xff]  ;;  %v2247_v58 = vld [vmem:[#allocation2 + $0x68] sm:$0xff] }
  0x58   :  { %v2249_v59 = vld [vmem:[#allocation2 + $0x70] sm:$0xff]  ;;  %v2253_v60 = vld [vmem:[#allocation2 + $0x78] sm:$0xff]  ;;  %v1219_v3 = vld [vmem:[%s2674_s2] ss:$0 sm:$0xff] }
  0x59   :  { %1679 = vmatpush3.bf16.msra.mxu0 %v1676_v12  ;;  %1707 = vmatpush3.bf16.msra.mxu1 %v1704_v26  ;;  %v318_v61 = vld [vmem:[#allocation7 + $0x70] sm:$0xff]  ;;  %v319_v62 = vld [vmem:[#allocation7 + $0x78] sm:$0xff] }
  0x5a   :  { %1681 = vmatprep.subr.bf16.mxu0 %v1680_v21  ;;  %1709 = vmatprep.subr.bf16.mxu1 %v1708_v32  ;;  %v1724_v63 = vpack.c.bf16 %v319_v62, %v318_v61 }
  0x5d   :  { %1683 = vmatpush3.bf16.msra.mxu0 %v1680_v21  ;;  %1711 = vmatpush3.bf16.msra.mxu1 %v1708_v32 }
  0x5e   :  { %1685 = vmatprep.subr.bf16.mxu0 %v1684_v27  ;;  %1713 = vmatprep.subr.bf16.mxu1 %v1712_v38 }
  0x61   :  { %1687 = vmatpush3.bf16.msra.mxu0 %v1684_v27  ;;  %1715 = vmatpush3.bf16.msra.mxu1 %v1712_v38 }
  0x62   :  { %1689 = vmatprep.subr.bf16.mxu0 %v1688_v33  ;;  %1717 = vmatprep.subr.bf16.mxu1 %v1716_v42 }
  0x65   :  { %1691 = vmatpush3.bf16.msra.mxu0 %v1688_v33  ;;  %1719 = vmatpush3.bf16.msra.mxu1 %v1716_v42 }
  0x66   :  { %1693 = vmatprep.subr.bf16.mxu0 %v1692_v39  ;;  %1721 = vmatprep.subr.bf16.mxu1 %v1720_v46 }
  0x69   :  { %1695 = vmatpush3.bf16.msra.mxu0 %v1692_v39  ;;  %1723 = vmatpush3.bf16.msra.mxu1 %v1720_v46 }
  0x6a   :  { %1725 = vmatprep.subr.bf16.mxu1 %v1724_v63 }
  0x6c   :  { %1417 = vmatmul.mubr.f32.vlgmr.msra.gmra.mrb[0].mxu0 %v2211_v45 }
  0x6d   :  { %1419 = vmatprep.mubr.f32.mxu0 %v2213_v47  ;;  %1727 = vmatpush3.bf16.msra.mxu1 %v1724_v63 }
  0x70   :  { %1420 = vmatmul.mubr.f32.gmra.mrb[2].mxu0 %v2217_v48 }
  0x71   :  { %1422 = vmatprep.mubr.f32.mxu0 %v2219_v49 }
  0x74   :  { %1423 = vmatmul.mubr.f32.gmra.mrb[4].mxu0 %v2223_v50 }
  0x75   :  { %1425 = vmatprep.mubr.f32.mxu0 %v2225_v51 }
  0x78   :  { %1426 = vmatmul.mubr.f32.gmra.mrb[6].mxu0 %v2229_v52 }
  0x79   :  { %1428 = vmatprep.mubr.f32.mxu0 %v2231_v53 }
  0x7c   :  { %1429 = vmatmul.mubr.f32.gmra.mrb[8].mxu0 %v2235_v54 }
  0x7d   :  { %1431 = vmatprep.mubr.f32.mxu0 %v2237_v55 }
  0x80   :  { %1432 = vmatmul.mubr.f32.gmra.mrb[10].mxu0 %v2241_v56 }
  0x81   :  { %1434 = vmatprep.mubr.f32.mxu0 %v2243_v57 }
  0x84   :  { %1435 = vmatmul.mubr.f32.gmra.mrb[12].mxu0 %v2247_v58 }
  0x85   :  { %1437 = vmatprep.mubr.f32.mxu0 %v2249_v59 }
  0x88   :  { %1438 = vmatmul.mubr.f32.gmra.mrb[14].mxu0 %v2253_v60 }
  0x89   :  { %1528 = vmatprep.mubr.f32.mxu0 %v2178_v9 }
 0x13f   :  { %v1418_v5 = vpop.f32.mrb[0].mxu0 }
 0x140   :  { %v273_v8 = vmul.f32 %v1418_v5, %v1219_v3  ;;  %v186_v12 = vpop.f32.mrb[1].mxu0 }
 0x141   :  { %v272_v15 = vmul.f32 %v1219_v3, %v186_v12 }
 0x142   :  { %v289_v18 = vsub.f32 %v2162_v1, %v273_v8 }
 0x143   :  { %v1421_v16 = vpop.f32.mrb[2].mxu0  ;;  %v288_v17 = vsub.f32 %v2160_v0, %v272_v15 }
 0x144   :  { %v275_v19 = vmul.f32 %v1421_v16, %v1219_v3  ;;  %v196_v20 = vpop.f32.mrb[3].mxu0 }
 0x145   :  { %v274_v21 = vmul.f32 %v1219_v3, %v196_v20  ;;  %1472 = vmatprep.mubr.f32.mxu1 %v288_v17 }
 0x146   :  { %1473 = vmatmul.mubr.f32.vlgmr.msra.gmra.mrb[0].mxu1 %v289_v18  ;;  %v291_v26 = vsub.f32 %v2168_v4, %v275_v19 }
 0x147   :  { %v290_v22 = vsub.f32 %v2164_v2, %v274_v21  ;;  %v1424_v23 = vpop.f32.mrb[4].mxu0 }
 0x148   :  { %v277_v27 = vmul.f32 %v1424_v23, %v1219_v3  ;;  %v206_v28 = vpop.f32.mrb[5].mxu0 }
 0x149   :  { %v276_v29 = vmul.f32 %v1219_v3, %v206_v28  ;;  %1475 = vmatprep.mubr.f32.mxu1 %v290_v22 }
 0x14a   :  { %1476 = vmatmul.mubr.f32.gmra.mrb[2].mxu1 %v291_v26  ;;  %v293_v1 = vsub.f32 %v2174_v7, %v277_v27 }
 0x14b   :  { %v292_v32 = vsub.f32 %v2172_v6, %v276_v29  ;;  %v1427_v0 = vpop.f32.mrb[6].mxu0 }
 0x14c   :  { %v279_v33 = vmul.f32 %v1427_v0, %v1219_v3  ;;  %v216_v34 = vpop.f32.mrb[7].mxu0 }
 0x14d   :  { %v278_v35 = vmul.f32 %v1219_v3, %v216_v34  ;;  %1478 = vmatprep.mubr.f32.mxu1 %v292_v32 }
 0x14e   :  { %1479 = vmatmul.mubr.f32.gmra.mrb[4].mxu1 %v293_v1  ;;  %v295_v4 = vsub.f32 %v2182_v11, %v279_v33 }
 0x14f   :  { %v294_v2 = vsub.f32 %v2180_v10, %v278_v35  ;;  %v1430_v38 = vpop.f32.mrb[8].mxu0 }
 0x150   :  { %v281_v39 = vmul.f32 %v1430_v38, %v1219_v3  ;;  %v226_v40 = vpop.f32.mrb[9].mxu0 }
 0x151   :  { %v280_v41 = vmul.f32 %v1219_v3, %v226_v40  ;;  %1481 = vmatprep.mubr.f32.mxu1 %v294_v2 }
 0x152   :  { %1482 = vmatmul.mubr.f32.gmra.mrb[6].mxu1 %v295_v4  ;;  %v297_v7 = vsub.f32 %v2189_v14, %v281_v39 }
 0x153   :  { %v296_v6 = vsub.f32 %v2187_v13, %v280_v41  ;;  %v1433_v42 = vpop.f32.mrb[10].mxu0 }
 0x154   :  { %v283_v43 = vmul.f32 %v1433_v42, %v1219_v3  ;;  %v236_v44 = vpop.f32.mrb[11].mxu0 }
 0x155   :  { %v282_v46 = vmul.f32 %v1219_v3, %v236_v44  ;;  %1484 = vmatprep.mubr.f32.mxu1 %v296_v6 }
 0x156   :  { %1485 = vmatmul.mubr.f32.gmra.mrb[8].mxu1 %v297_v7  ;;  %v299_v11 = vsub.f32 %v2195_v25, %v283_v43  ;;  %v2280_v25 = vld [vmem:[%s2676_s4] ss:$0 sm:$0xff] }
 0x157   :  { %v298_v10 = vsub.f32 %v2193_v24, %v282_v46  ;;  %v1436_v61 = vpop.f32.mrb[12].mxu0 }
 0x158   :  { %v285_v62 = vmul.f32 %v1436_v61, %v1219_v3  ;;  %v246_v63 = vpop.f32.mrb[13].mxu0 }
 0x159   :  { %v284_v5 = vmul.f32 %v1219_v3, %v246_v63  ;;  %1487 = vmatprep.mubr.f32.mxu1 %v298_v10 }
 0x15a   :  { %1488 = vmatmul.mubr.f32.gmra.mrb[10].mxu1 %v299_v11  ;;  %v301_v14 = vsub.f32 %v2201_v31, %v285_v62 }
 0x15b   :  { %v300_v13 = vsub.f32 %v2199_v30, %v284_v5  ;;  %v1439_v8 = vpop.f32.mrb[14].mxu0 }
 0x15c   :  { %v287_v12 = vmul.f32 %v1439_v8, %v1219_v3  ;;  %v256_v15 = vpop.f32.mrb[15].mxu0 }
 0x15d   :  { %v286_v16 = vmul.f32 %v1219_v3, %v256_v15  ;;  %1490 = vmatprep.mubr.f32.mxu1 %v300_v13 }
 0x15e   :  { %1491 = vmatmul.mubr.f32.gmra.mrb[12].mxu1 %v301_v14  ;;  %v303_v17 = vsub.f32 %v2207_v37, %v287_v12 }
 0x15f   :  { %v302_v24 = vsub.f32 %v2205_v36, %v286_v16 }
 0x161   :  { %1493 = vmatprep.mubr.f32.mxu1 %v302_v24 }
 0x162   :  { %1494 = vmatmul.mubr.f32.gmra.mrb[14].mxu1 %v303_v17 }
 0x163   :  { %1584 = vmatprep.mubr.f32.mxu1 %v2178_v9 }
 0x219   :  { %v1474_v30 = vpop.f32.mrb[0].mxu1 }
 0x21a   :  { %v2283_v31 = vadd.f32 %v1474_v30, %v2280_v25  ;;  %v393_v3 = vpop.f32.mrb[1].mxu1 }
 0x21b   :  { %v2286_v18 = vadd.f32 %v2280_v25, %v393_v3 }
 0x21c   :  { %v473_v36 = vmax.f32 %v2283_v31, 0.0 }
 0x21d   :  { %v472_v37 = vmax.f32 %v2286_v18, 0.0  ;;  %v1477_v19 = vpop.f32.mrb[2].mxu1 }
 0x21e   :  { %v2291_v9 = vadd.f32 %v1477_v19, %v2280_v25  ;;  %v403_v20 = vpop.f32.mrb[3].mxu1 }
 0x21f   :  { %v1728_v21 = vpack.c.bf16 %v473_v36, %v472_v37  ;;  %v2298_v22 = vadd.f32 %v2280_v25, %v403_v20 }
 0x220   :  { %v475_v23 = vmax.f32 %v2291_v9, 0.0 }
 0x221   :  { %v474_v26 = vmax.f32 %v2298_v22, 0.0  ;;  %v1480_v27 = vpop.f32.mrb[4].mxu1  ;;  %1729 = vmatprep.subr.bf16.mxu0 %v1728_v21 }
 0x222   :  { %v2303_v28 = vadd.f32 %v1480_v27, %v2280_v25  ;;  %v413_v29 = vpop.f32.mrb[5].mxu1  ;;  %1731 = vmatpush3.bf16.msra.mxu0 %v1728_v21 }
 0x223   :  { %v1732_v32 = vpack.c.bf16 %v475_v23, %v474_v26  ;;  %v2310_v0 = vadd.f32 %v2280_v25, %v413_v29 }
 0x224   :  { %v477_v1 = vmax.f32 %v2303_v28, 0.0 }
 0x225   :  { %v476_v33 = vmax.f32 %v2310_v0, 0.0  ;;  %v1483_v34 = vpop.f32.mrb[6].mxu1  ;;  %1733 = vmatprep.subr.bf16.mxu0 %v1732_v32 }
 0x226   :  { %v2315_v35 = vadd.f32 %v1483_v34, %v2280_v25  ;;  %v423_v2 = vpop.f32.mrb[7].mxu1  ;;  %1735 = vmatpush3.bf16.msra.mxu0 %v1732_v32  ;;  %v857_v34 = vld [vmem:[#allocation8 + $0x8] sm:$0xff] }
 0x227   :  { %v1736_v38 = vpack.c.bf16 %v477_v1, %v476_v33  ;;  %v2322_v4 = vadd.f32 %v2280_v25, %v423_v2  ;;  %v858_v2 = vld [vmem:[#allocation8 + $0x10] sm:$0xff] }
 0x228   :  { %v479_v39 = vmax.f32 %v2315_v35, 0.0 }
 0x229   :  { %v478_v40 = vmax.f32 %v2322_v4, 0.0  ;;  %v1486_v41 = vpop.f32.mrb[8].mxu1  ;;  %1737 = vmatprep.subr.bf16.mxu0 %v1736_v38 }
 0x22a   :  { %v2327_v6 = vadd.f32 %v1486_v41, %v2280_v25  ;;  %v433_v42 = vpop.f32.mrb[9].mxu1  ;;  %1739 = vmatpush3.bf16.msra.mxu0 %v1736_v38  ;;  %v859_v41 = vld [vmem:[#allocation8 + $0x18] sm:$0xff] }
 0x22b   :  { %v1740_v7 = vpack.c.bf16 %v479_v39, %v478_v40  ;;  %v2334_v43 = vadd.f32 %v2280_v25, %v433_v42  ;;  %v2395_v42 = vpack.c.bf16 %v859_v41, %v858_v2  ;;  %v869_v2 = vld [vmem:[#allocation8 + $0x68] sm:$0xff] }
 0x22c   :  { %v481_v44 = vmax.f32 %v2327_v6, 0.0 }
 0x22d   :  { %v480_v46 = vmax.f32 %v2334_v43, 0.0  ;;  %v1489_v10 = vpop.f32.mrb[10].mxu1  ;;  %1741 = vmatprep.subr.bf16.mxu0 %v1740_v7 }
 0x22e   :  { %v2339_v61 = vadd.f32 %v1489_v10, %v2280_v25  ;;  %v443_v11 = vpop.f32.mrb[11].mxu1  ;;  %1743 = vmatpush3.bf16.msra.mxu0 %v1740_v7  ;;  %v860_v7 = vld [vmem:[#allocation8 + $0x20] sm:$0xff]  ;;  %v861_v10 = vld [vmem:[#allocation8 + $0x28] sm:$0xff] }
 0x22f   :  { %v1744_v62 = vpack.c.bf16 %v481_v44, %v480_v46  ;;  %v2346_v63 = vadd.f32 %v2280_v25, %v443_v11  ;;  %v2400_v11 = vpack.c.bf16 %v861_v10, %v860_v7  ;;  %v2424_v7 = vld [vmem:[%s2677_s5] ss:$0 sm:$0xff] }
 0x230   :  { %v483_v5 = vmax.f32 %v2339_v61, 0.0 }
 0x231   :  { %v482_v13 = vmax.f32 %v2346_v63, 0.0  ;;  %v1492_v8 = vpop.f32.mrb[12].mxu1  ;;  %1745 = vmatprep.subr.bf16.mxu0 %v1744_v62 }
 0x232   :  { %v2351_v14 = vadd.f32 %v1492_v8, %v2280_v25  ;;  %v453_v12 = vpop.f32.mrb[13].mxu1  ;;  %1747 = vmatpush3.bf16.msra.mxu0 %v1744_v62  ;;  %v862_v62 = vld [vmem:[#allocation8 + $0x30] sm:$0xff]  ;;  %v863_v8 = vld [vmem:[#allocation8 + $0x38] sm:$0xff] }
 0x233   :  { %v1748_v15 = vpack.c.bf16 %v483_v5, %v482_v13  ;;  %v2358_v16 = vadd.f32 %v2280_v25, %v453_v12  ;;  %v2404_v12 = vpack.c.bf16 %v863_v8, %v862_v62 }
 0x234   :  { %v485_v24 = vmax.f32 %v2351_v14, 0.0 }
 0x235   :  { %v484_v17 = vmax.f32 %v2358_v16, 0.0  ;;  %v1495_v30 = vpop.f32.mrb[14].mxu1  ;;  %1749 = vmatprep.subr.bf16.mxu0 %v1748_v15 }
 0x236   :  { %v2363_v3 = vadd.f32 %v1495_v30, %v2280_v25  ;;  %v463_v19 = vpop.f32.mrb[15].mxu1  ;;  %1751 = vmatpush3.bf16.msra.mxu0 %v1748_v15  ;;  %v864_v15 = vld [vmem:[#allocation8 + $0x40] sm:$0xff]  ;;  %v865_v30 = vld [vmem:[#allocation8 + $0x48] sm:$0xff] }
 0x237   :  { %v1752_v20 = vpack.c.bf16 %v485_v24, %v484_v17  ;;  %v2370_v21 = vadd.f32 %v2280_v25, %v463_v19  ;;  %v856_v25 = vld [vmem:[#allocation8] sm:$0xff]  ;;  %v2408_v19 = vpack.c.bf16 %v865_v30, %v864_v15 }
 0x238   :  { %v487_v27 = vmax.f32 %v2363_v3, 0.0  ;;  %v2393_v38 = vpack.c.bf16 %v857_v34, %v856_v25  ;;  %v868_v34 = vld [vmem:[#allocation8 + $0x60] sm:$0xff] }
 0x239   :  { %v2682_v29 = vmax.f32 %v2370_v21, 0.0  ;;  %1753 = vmatprep.subr.bf16.mxu0 %v1752_v20  ;;  %v2416_v41 = vpack.c.bf16 %v869_v2, %v868_v34 }
 0x23a   :  { %1755 = vmatpush3.bf16.msra.mxu0 %v1752_v20  ;;  %v866_v20 = vld [vmem:[#allocation8 + $0x50] sm:$0xff] }
 0x23b   :  { %v1756_v32 = vpack.c.bf16 %v487_v27, %v2682_v29 }
 0x23d   :  { %1757 = vmatprep.subr.bf16.mxu0 %v1756_v32 }
 0x23e   :  { %1759 = vmatpush3.bf16.msra.mxu0 %v1756_v32  ;;  %v867_v32 = vld [vmem:[#allocation8 + $0x58] sm:$0xff] }
 0x23f   :  { %1793 = vmatprep.subr.bf16.mxu0 %v2393_v38  ;;  %v2412_v25 = vpack.c.bf16 %v867_v32, %v866_v20 }
 0x241   :  { %1529 = vmatmul.mubr.f32.vlgmr.msra.gmra.mrb[16].mxu0 %v2211_v45 }
 0x242   :  { %1531 = vmatprep.mubr.f32.mxu0 %v2213_v47  ;;  %1795 = vmatpush3.bf16.msra.mxu0 %v2393_v38 }
 0x243   :  { %1797 = vmatprep.subr.bf16.mxu0 %v2395_v42 }
 0x245   :  { %1532 = vmatmul.mubr.f32.gmra.mrb[18].mxu0 %v2217_v48 }
 0x246   :  { %1534 = vmatprep.mubr.f32.mxu0 %v2219_v49  ;;  %1799 = vmatpush3.bf16.msra.mxu0 %v2395_v42 }
 0x247   :  { %1801 = vmatprep.subr.bf16.mxu0 %v2400_v11 }
 0x249   :  { %1535 = vmatmul.mubr.f32.gmra.mrb[20].mxu0 %v2223_v50 }
 0x24a   :  { %1537 = vmatprep.mubr.f32.mxu0 %v2225_v51  ;;  %1803 = vmatpush3.bf16.msra.mxu0 %v2400_v11 }
 0x24b   :  { %1805 = vmatprep.subr.bf16.mxu0 %v2404_v12 }
 0x24d   :  { %1538 = vmatmul.mubr.f32.gmra.mrb[22].mxu0 %v2229_v52 }
 0x24e   :  { %1540 = vmatprep.mubr.f32.mxu0 %v2231_v53  ;;  %1807 = vmatpush3.bf16.msra.mxu0 %v2404_v12 }
 0x24f   :  { %1809 = vmatprep.subr.bf16.mxu0 %v2408_v19 }
 0x251   :  { %1541 = vmatmul.mubr.f32.gmra.mrb[24].mxu0 %v2235_v54 }
 0x252   :  { %1543 = vmatprep.mubr.f32.mxu0 %v2237_v55  ;;  %1811 = vmatpush3.bf16.msra.mxu0 %v2408_v19 }
 0x253   :  { %1813 = vmatprep.subr.bf16.mxu0 %v2412_v25 }
 0x255   :  { %1544 = vmatmul.mubr.f32.gmra.mrb[26].mxu0 %v2241_v56 }
 0x256   :  { %1546 = vmatprep.mubr.f32.mxu0 %v2243_v57  ;;  %1815 = vmatpush3.bf16.msra.mxu0 %v2412_v25 }
 0x257   :  { %1817 = vmatprep.subr.bf16.mxu0 %v2416_v41 }
 0x259   :  { %1547 = vmatmul.mubr.f32.gmra.mrb[28].mxu0 %v2247_v58 }
 0x25a   :  { %1549 = vmatprep.mubr.f32.mxu0 %v2249_v59  ;;  %1819 = vmatpush3.bf16.msra.mxu0 %v2416_v41 }
 0x25d   :  { %1550 = vmatmul.mubr.f32.gmra.mrb[30].mxu0 %v2253_v60 }
 0x314   :  { %v1530_v10 = vpop.f32.mrb[16].mxu0 }
 0x315   :  { %v641_v62 = vmul.f32 %v1530_v10, %v2424_v7  ;;  %v555_v8 = vpop.f32.mrb[17].mxu0 }
 0x316   :  { %v640_v15 = vmul.f32 %v2424_v7, %v555_v8 }
 0x317   :  { %v2430_v30 = vsub.f32 %v473_v36, %v641_v62 }
 0x318   :  { %v2434_v20 = vsub.f32 %v472_v37, %v640_v15  ;;  %v1533_v32 = vpop.f32.mrb[18].mxu0 }
 0x319   :  { %v643_v34 = vmul.f32 %v1533_v32, %v2424_v7  ;;  %v565_v2 = vpop.f32.mrb[19].mxu0 }
 0x31a   :  { %v642_v29 = vmul.f32 %v2424_v7, %v565_v2  ;;  %v1760_v10 = vpack.c.bf16 %v2430_v30, %v2434_v20 }
 0x31b   :  { %v2442_v8 = vsub.f32 %v475_v23, %v643_v34 }
 0x31c   :  { %v2446_v31 = vsub.f32 %v474_v26, %v642_v29  ;;  %v1536_v18 = vpop.f32.mrb[20].mxu0  ;;  %1761 = vmatprep.subr.bf16.mxu1 %v1760_v10 }
 0x31d   :  { %v645_v36 = vmul.f32 %v1536_v18, %v2424_v7  ;;  %v575_v37 = vpop.f32.mrb[21].mxu0  ;;  %1763 = vmatpush3.bf16.msra.mxu1 %v1760_v10 }
 0x31e   :  { %v644_v62 = vmul.f32 %v2424_v7, %v575_v37  ;;  %v1764_v15 = vpack.c.bf16 %v2442_v8, %v2446_v31 }
 0x31f   :  { %v2454_v9 = vsub.f32 %v477_v1, %v645_v36 }
 0x320   :  { %v2458_v22 = vsub.f32 %v476_v33, %v644_v62  ;;  %v1539_v23 = vpop.f32.mrb[22].mxu0  ;;  %1765 = vmatprep.subr.bf16.mxu1 %v1764_v15 }
 0x321   :  { %v647_v26 = vmul.f32 %v1539_v23, %v2424_v7  ;;  %v585_v29 = vpop.f32.mrb[23].mxu0  ;;  %1767 = vmatpush3.bf16.msra.mxu1 %v1764_v15 }
 0x322   :  { %v646_v32 = vmul.f32 %v2424_v7, %v585_v29  ;;  %v1768_v34 = vpack.c.bf16 %v2454_v9, %v2458_v22 }
 0x323   :  { %v2466_v28 = vsub.f32 %v479_v39, %v647_v26 }
 0x324   :  { %v2470_v0 = vsub.f32 %v478_v40, %v646_v32  ;;  %v1542_v1 = vpop.f32.mrb[24].mxu0  ;;  %1769 = vmatprep.subr.bf16.mxu1 %v1768_v34 }
 0x325   :  { %v649_v33 = vmul.f32 %v1542_v1, %v2424_v7  ;;  %v595_v2 = vpop.f32.mrb[25].mxu0  ;;  %1771 = vmatpush3.bf16.msra.mxu1 %v1768_v34 }
 0x326   :  { %v648_v10 = vmul.f32 %v2424_v7, %v595_v2  ;;  %v1772_v18 = vpack.c.bf16 %v2466_v28, %v2470_v0 }
 0x327   :  { %v2478_v35 = vsub.f32 %v481_v44, %v649_v33 }
 0x328   :  { %v2482_v4 = vsub.f32 %v480_v46, %v648_v10  ;;  %v1545_v39 = vpop.f32.mrb[26].mxu0  ;;  %1773 = vmatprep.subr.bf16.mxu1 %v1772_v18 }
 0x329   :  { %v651_v40 = vmul.f32 %v1545_v39, %v2424_v7  ;;  %v605_v36 = vpop.f32.mrb[27].mxu0  ;;  %1775 = vmatpush3.bf16.msra.mxu1 %v1772_v18 }
 0x32a   :  { %v650_v37 = vmul.f32 %v2424_v7, %v605_v36  ;;  %v1776_v62 = vpack.c.bf16 %v2478_v35, %v2482_v4 }
 0x32b   :  { %v2490_v6 = vsub.f32 %v483_v5, %v651_v40 }
 0x32c   :  { %v2494_v43 = vsub.f32 %v482_v13, %v650_v37  ;;  %v1548_v44 = vpop.f32.mrb[28].mxu0  ;;  %1777 = vmatprep.subr.bf16.mxu1 %v1776_v62 }
 0x32d   :  { %v653_v46 = vmul.f32 %v1548_v44, %v2424_v7  ;;  %v615_v15 = vpop.f32.mrb[29].mxu0  ;;  %1779 = vmatpush3.bf16.msra.mxu1 %v1776_v62 }
 0x32e   :  { %v652_v23 = vmul.f32 %v2424_v7, %v615_v15  ;;  %v1780_v26 = vpack.c.bf16 %v2490_v6, %v2494_v43 }
 0x32f   :  { %v2502_v61 = vsub.f32 %v485_v24, %v653_v46  ;;  %v2683_v24 = vmax.f32 %v2370_v21, 0.0 }
 0x330   :  { %v2506_v63 = vsub.f32 %v484_v17, %v652_v23  ;;  %v1551_v5 = vpop.f32.mrb[30].mxu0  ;;  %1781 = vmatprep.subr.bf16.mxu1 %v1780_v26 }
 0x331   :  { %v655_v13 = vmul.f32 %v1551_v5, %v2424_v7  ;;  %v625_v29 = vpop.f32.mrb[31].mxu0  ;;  %1783 = vmatpush3.bf16.msra.mxu1 %v1780_v26 }
 0x332   :  { %v654_v32 = vmul.f32 %v2424_v7, %v625_v29  ;;  %v1784_v34 = vpack.c.bf16 %v2502_v61, %v2506_v63 }
 0x333   :  { %v2514_v14 = vsub.f32 %v487_v27, %v655_v13 }
 0x334   :  { %v2518_v16 = vsub.f32 %v2683_v24, %v654_v32  ;;  %1785 = vmatprep.subr.bf16.mxu1 %v1784_v34 }
 0x335   :  { %1787 = vmatpush3.bf16.msra.mxu1 %v1784_v34 }
 0x336   :  { %v1788_v17 = vpack.c.bf16 %v2514_v14, %v2518_v16 }
 0x338   :  { %1789 = vmatprep.subr.bf16.mxu1 %v1788_v17 }
 0x339   :  { %1791 = vmatpush3.bf16.msra.mxu1 %v1788_v17 }
 0x33a   :  { %1824 = vmatprep.subr.bf16.mxu1 %v2393_v38 }
 0x33c   :  { %1585 = vmatmul.mubr.f32.vlgmr.msra.gmra.mrb[16].mxu1 %v2211_v45  ;;  %v870_v45 = vld [vmem:[#allocation8 + $0x70] sm:$0xff] }
 0x33d   :  { %1587 = vmatprep.mubr.f32.mxu1 %v2213_v47  ;;  %1832 = vmatpush3.bf16.msra.mxu1 %v2393_v38  ;;  %v871_v47 = vld [vmem:[#allocation8 + $0x78] sm:$0xff] }
 0x33e   :  { %1825 = vmatprep.subr.bf16.mxu1 %v2395_v42 }
 0x340   :  { %1588 = vmatmul.mubr.f32.gmra.mrb[18].mxu1 %v2217_v48  ;;  %v1820_v48 = vpack.c.bf16 %v871_v47, %v870_v45 }
 0x341   :  { %1590 = vmatprep.mubr.f32.mxu1 %v2219_v49  ;;  %1833 = vmatpush3.bf16.msra.mxu1 %v2395_v42  ;;  %v1222_v49 = vld [vmem:[%s2678_s6] ss:$0 sm:$0xff] }
 0x342   :  { %1826 = vmatprep.subr.bf16.mxu1 %v2400_v11  ;;  %1821 = vmatprep.subr.bf16.mxu0 %v1820_v48 }
 0x343   :  { %1823 = vmatpush3.bf16.msra.mxu0 %v1820_v48 }
 0x344   :  { %1591 = vmatmul.mubr.f32.gmra.mrb[20].mxu1 %v2223_v50 }
 0x345   :  { %1593 = vmatprep.mubr.f32.mxu1 %v2225_v51  ;;  %1834 = vmatpush3.bf16.msra.mxu1 %v2400_v11 }
 0x346   :  { %1827 = vmatprep.subr.bf16.mxu1 %v2404_v12 }
 0x348   :  { %1594 = vmatmul.mubr.f32.gmra.mrb[22].mxu1 %v2229_v52 }
 0x349   :  { %1596 = vmatprep.mubr.f32.mxu1 %v2231_v53  ;;  %1835 = vmatpush3.bf16.msra.mxu1 %v2404_v12 }
 0x34a   :  { %1828 = vmatprep.subr.bf16.mxu1 %v2408_v19 }
 0x34c   :  { %1597 = vmatmul.mubr.f32.gmra.mrb[24].mxu1 %v2235_v54 }
 0x34d   :  { %1599 = vmatprep.mubr.f32.mxu1 %v2237_v55  ;;  %1836 = vmatpush3.bf16.msra.mxu1 %v2408_v19 }
 0x34e   :  { %1829 = vmatprep.subr.bf16.mxu1 %v2412_v25 }
 0x350   :  { %1600 = vmatmul.mubr.f32.gmra.mrb[26].mxu1 %v2241_v56 }
 0x351   :  { %1602 = vmatprep.mubr.f32.mxu1 %v2243_v57  ;;  %1837 = vmatpush3.bf16.msra.mxu1 %v2412_v25 }
 0x352   :  { %1830 = vmatprep.subr.bf16.mxu1 %v2416_v41 }
 0x354   :  { %1603 = vmatmul.mubr.f32.gmra.mrb[28].mxu1 %v2247_v58 }
 0x355   :  { %1605 = vmatprep.mubr.f32.mxu1 %v2249_v59  ;;  %1838 = vmatpush3.bf16.msra.mxu1 %v2416_v41 }
 0x356   :  { %1831 = vmatprep.subr.bf16.mxu1 %v1820_v48 }
 0x358   :  { %1606 = vmatmul.mubr.f32.gmra.mrb[30].mxu1 %v2253_v60 }
 0x359   :  { %1839 = vmatpush3.bf16.msra.mxu1 %v1820_v48 }
 0x40f   :  { %v1586_v50 = vpop.f32.mrb[16].mxu1 }
 0x410   :  { %v825_v51 = vmul.f32 %v1586_v50, %v1222_v49  ;;  %v738_v52 = vpop.f32.mrb[17].mxu1 }
 0x411   :  { %v824_v53 = vmul.f32 %v1222_v49, %v738_v52 }
 0x412   :  { %v841_v56 = vsub.f32 %v2430_v30, %v825_v51 }
 0x413   :  { %v840_v54 = vsub.f32 %v2434_v20, %v824_v53  ;;  %v1589_v55 = vpop.f32.mrb[18].mxu1 }
 0x414   :  { %v827_v57 = vmul.f32 %v1589_v55, %v1222_v49  ;;  %v748_v58 = vpop.f32.mrb[19].mxu1 }
 0x415   :  { %v826_v59 = vmul.f32 %v1222_v49, %v748_v58  ;;  %1640 = vmatprep.mubr.f32.mxu0 %v840_v54 }
 0x416   :  { %1641 = vmatmul.mubr.f32.vlgmr.msra.gmra.mrb[32].mxu0 %v841_v56  ;;  %v843_v21 = vsub.f32 %v2442_v8, %v827_v57 }
 0x417   :  { %v842_v60 = vsub.f32 %v2446_v31, %v826_v59  ;;  %v1592_v3 = vpop.f32.mrb[20].mxu1 }
 0x418   :  { %v829_v27 = vmul.f32 %v1592_v3, %v1222_v49  ;;  %v758_v38 = vpop.f32.mrb[21].mxu1 }
 0x419   :  { %v828_v42 = vmul.f32 %v1222_v49, %v758_v38  ;;  %1643 = vmatprep.mubr.f32.mxu0 %v842_v60 }
 0x41a   :  { %1644 = vmatmul.mubr.f32.gmra.mrb[34].mxu0 %v843_v21  ;;  %v845_v19 = vsub.f32 %v2454_v9, %v829_v27 }
 0x41b   :  { %v844_v11 = vsub.f32 %v2458_v22, %v828_v42  ;;  %v1595_v12 = vpop.f32.mrb[22].mxu1 }
 0x41c   :  { %v831_v25 = vmul.f32 %v1595_v12, %v1222_v49  ;;  %v768_v41 = vpop.f32.mrb[23].mxu1 }
 0x41d   :  { %v830_v7 = vmul.f32 %v1222_v49, %v768_v41  ;;  %1646 = vmatprep.mubr.f32.mxu0 %v844_v11 }
 0x41e   :  { %1647 = vmatmul.mubr.f32.gmra.mrb[36].mxu0 %v845_v19  ;;  %v847_v8 = vsub.f32 %v2466_v28, %v831_v25 }
 0x41f   :  { %v846_v30 = vsub.f32 %v2470_v0, %v830_v7  ;;  %v1598_v20 = vpop.f32.mrb[24].mxu1 }
 0x420   :  { %v833_v31 = vmul.f32 %v1598_v20, %v1222_v49  ;;  %v778_v1 = vpop.f32.mrb[25].mxu1 }
 0x421   :  { %v832_v33 = vmul.f32 %v1222_v49, %v778_v1  ;;  %1649 = vmatprep.mubr.f32.mxu0 %v846_v30 }
 0x422   :  { %1650 = vmatmul.mubr.f32.gmra.mrb[38].mxu0 %v847_v8  ;;  %v849_v9 = vsub.f32 %v2478_v35, %v833_v31 }
 0x423   :  { %v848_v22 = vsub.f32 %v2482_v4, %v832_v33  ;;  %v1601_v2 = vpop.f32.mrb[26].mxu1 }
 0x424   :  { %v835_v10 = vmul.f32 %v1601_v2, %v1222_v49  ;;  %v788_v18 = vpop.f32.mrb[27].mxu1 }
 0x425   :  { %v834_v39 = vmul.f32 %v1222_v49, %v788_v18  ;;  %1652 = vmatprep.mubr.f32.mxu1 %v848_v22 }
 0x426   :  { %1653 = vmatmul.mubr.f32.vlgmr.msra.gmra.mrb[32].mxu1 %v849_v9  ;;  %v851_v28 = vsub.f32 %v2490_v6, %v835_v10  ;;  %v1223_v6 = vld [vmem:[%s2680_s8] ss:$0 sm:$0xff]  ;;  %s2035_s8 = smov [#allocation10]  }
 0x427   :  { %v850_v0 = vsub.f32 %v2494_v43, %v834_v39  ;;  %v1604_v40 = vpop.f32.mrb[28].mxu1  ;;  %s1205_s23 = sshll.u32 %s2035_s8, 4  ;;  %s1206_s23 = int_to_ptr.vmem [resolvable:$true] %s1205_s23 }
 0x428   :  { %v837_v36 = vmul.f32 %v1604_v40, %v1222_v49  ;;  %v798_v37 = vpop.f32.mrb[29].mxu1  ;;  %s1999_s24 = scalar_lea.vmem %s1206_s23, 2048  ;;  %p2004_p5 = scmp.lt.s32.totalorder %s1206_s23, %s1206_s23 }
 0x429   :  { %v836_v62 = vmul.f32 %v1222_v49, %v798_v37  ;;  %1655 = vmatprep.mubr.f32.mxu1 %v850_v0  ;;  %p2000_p4 = scmp.ne.s32.totalorder %s1206_s23, %s1999_s24  ;;  %p2005_p6 = scmp.lt.s32.totalorder %s1999_s24, %s1999_s24 }
 0x42a   :  { %1656 = vmatmul.mubr.f32.gmra.mrb[34].mxu1 %v851_v28  ;;  %v853_v35 = vsub.f32 %v2502_v61, %v837_v36 }
 0x42b   :  { %v852_v4 = vsub.f32 %v2506_v63, %v836_v62  ;;  %v1607_v44 = vpop.f32.mrb[30].mxu1  ;;  %p2006_p7 = por %p2005_p6, %p2004_p5 }
 0x42c   :  { %v839_v46 = vmul.f32 %v1607_v44, %v1222_v49  ;;  %v808_v15 = vpop.f32.mrb[31].mxu1 }
 0x42d   :  { %v838_v23 = vmul.f32 %v1222_v49, %v808_v15  ;;  %1658 = vmatprep.mubr.f32.mxu1 %v852_v4  ;;  %p2007_p8 = pnand %p2006_p7, %p2000_p4 }
 0x42e   :  { %1659 = vmatmul.mubr.f32.gmra.mrb[36].mxu1 %v853_v35  ;;  %v855_v26 = vsub.f32 %v2514_v14, %v839_v46 }
 0x42f   :  { %v854_v43 = vsub.f32 %v2518_v16, %v838_v23 }
 0x431   :  { %1661 = vmatprep.mubr.f32.mxu1 %v854_v43 }
 0x432   :  { %1662 = vmatmul.mubr.f32.gmra.mrb[38].mxu1 %v855_v26 }
 0x4e9   :  { %v1642_v5 = vpop.f32.mrb[32].mxu0 }
 0x4ea   :  { %v951_v63 = vadd.f32 %v1642_v5, %v1223_v6  ;;  %v945_v13 = vpop.f32.mrb[33].mxu0 }
 0x4eb   :  { %v946_v29 = vadd.f32 %v1223_v6, %v945_v13 }
 0x4ec   :  { %1026 = vmax.xlane.f32.xlu0 %v951_v63 }
 0x4ed   :  { %v1645_v61 = vpop.f32.mrb[34].mxu0 }
 0x4ee   :  { %v961_v32 = vadd.f32 %v1645_v61, %v1223_v6  ;;  %v955_v34 = vpop.f32.mrb[35].mxu0 }
 0x4ef   :  { %v956_v16 = vadd.f32 %v1223_v6, %v955_v34 }
 0x4f0   :  { %1024 = vmax.xlane.f32.xlu0 %v946_v29  ;;  %1030 = vmax.xlane.f32.xlu1 %v961_v32 }
 0x4f1   :  { %v1648_v24 = vpop.f32.mrb[36].mxu0 }
 0x4f2   :  { %v965_v17 = vpop.f32.mrb[37].mxu0  ;;  %v971_v47 = vadd.f32 %v1648_v24, %v1223_v6 }
 0x4f3   :  { %v966_v14 = vadd.f32 %v1223_v6, %v965_v17 }
 0x4f4   :  { %1028 = vmax.xlane.f32.xlu1 %v956_v16 }
 0x4f5   :  { %1032 = vmax.xlane.f32.xlu0 %v966_v14  ;;  %v1651_v45 = vpop.f32.mrb[38].mxu0 }
 0x4f6   :  { %v975_v48 = vpop.f32.mrb[39].mxu0  ;;  %v981_v51 = vadd.f32 %v1651_v45, %v1223_v6 }
 0x4f7   :  { %v976_v49 = vadd.f32 %v1223_v6, %v975_v48 }
 0x4f8   :  { %1034 = vmax.xlane.f32.xlu1 %v971_v47 }
 0x4f9   :  { %1036 = vmax.xlane.f32.xlu0 %v976_v49  ;;  %v1654_v50 = vpop.f32.mrb[32].mxu1 }
 0x4fa   :  { %v985_v52 = vpop.f32.mrb[33].mxu1  ;;  %v991_v55 = vadd.f32 %v1654_v50, %v1223_v6 }
 0x4fb   :  { %v986_v53 = vadd.f32 %v1223_v6, %v985_v52 }
 0x4fc   :  { %1038 = vmax.xlane.f32.xlu1 %v981_v51 }
 0x4fd   :  { %v1657_v54 = vpop.f32.mrb[34].mxu1  ;;  %1040 = vmax.xlane.f32.xlu0 %v986_v53 }
 0x4fe   :  { %v995_v56 = vpop.f32.mrb[35].mxu1  ;;  %v2573_v59 = vadd.f32 %v1657_v54, %v1223_v6 }
 0x4ff   :  { %v996_v57 = vadd.f32 %v1223_v6, %v995_v56 }
 0x500   :  { %1042 = vmax.xlane.f32.xlu1 %v991_v55 }
 0x501   :  { %v1660_v58 = vpop.f32.mrb[36].mxu1  ;;  %1044 = vmax.xlane.f32.xlu0 %v996_v57 }
 0x502   :  { %v1005_v60 = vpop.f32.mrb[37].mxu1  ;;  %v2579_v27 = vadd.f32 %v1660_v58, %v1223_v6 }
 0x503   :  { %v2575_v3 = vadd.f32 %v1223_v6, %v1005_v60 }
 0x504   :  { %1046 = vmax.xlane.f32.xlu1 %v2573_v59 }
 0x505   :  { %1048 = vmax.xlane.f32.xlu0 %v2575_v3  ;;  %v1663_v21 = vpop.f32.mrb[38].mxu1 }
 0x506   :  { %v1015_v38 = vpop.f32.mrb[39].mxu1  ;;  %v2585_v11 = vadd.f32 %v1663_v21, %v1223_v6 }
 0x507   :  { %v2581_v42 = vadd.f32 %v1223_v6, %v1015_v38 }
 0x508   :  { %1050 = vmax.xlane.f32.xlu1 %v2579_v27 }
 0x509   :  { %1052 = vmax.xlane.f32.xlu0 %v2581_v42 }
 0x50c   :  { %1054 = vmax.xlane.f32.xlu1 %v2585_v11 }
 0x579   :  { %v1027_v12 = vpop.xlane.xlu0 %1026 }
 0x57a   :  { %v2588_v19 = vsub.f32 %v951_v63, %v1027_v12 }
 0x57c   :  { %v1074_v25 = vmul.f32 1.442695, %v2588_v19 }
 0x57d   :  { %v1025_v41 = vpop.xlane.xlu0 %1024  ;;  %v1031_v7 = vpop.xlane.xlu1 %1030 }
 0x57e   :  { %1847 = vpow2.f32 %v1074_v25  ;;  %v2591_v30 = vsub.f32 %v946_v29, %v1025_v41  ;;  %v2593_v20 = vsub.f32 %v961_v32, %v1031_v7 }
 0x580   :  { %v1072_v8 = vmul.f32 1.442695, %v2591_v30  ;;  %v1078_v31 = vmul.f32 1.442695, %v2593_v20 }
 0x581   :  { %v1029_v1 = vpop.xlane.xlu1 %1028 }
 0x582   :  { %1849 = vpow2.f32 %v1072_v8  ;;  %v2597_v33 = vsub.f32 %v956_v16, %v1029_v1  ;;  %v1033_v22 = vpop.xlane.xlu0 %1032 }
 0x583   :  { %1851 = vpow2.f32 %v1078_v31  ;;  %v2599_v2 = vsub.f32 %v966_v14, %v1033_v22 }
 0x584   :  { %v1076_v9 = vmul.f32 1.442695, %v2597_v33 }
 0x585   :  { %v1080_v10 = vmul.f32 1.442695, %v2599_v2  ;;  %v1035_v18 = vpop.xlane.xlu1 %1034 }
 0x586   :  { %1853 = vpow2.f32 %v1076_v9  ;;  %v2603_v39 = vsub.f32 %v971_v47, %v1035_v18  ;;  %v1037_v0 = vpop.xlane.xlu0 %1036 }
 0x587   :  { %v2605_v40 = vsub.f32 %v976_v49, %v1037_v0  ;;  %1855 = vpow2.f32 %v1080_v10 }
 0x588   :  { %v1848_v28 = vpop.eup %1847  ;;  %v1082_v36 = vmul.f32 1.442695, %v2603_v39 }
 0x589   :  { %v1084_v37 = vmul.f32 1.442695, %v2605_v40  ;;  %v1039_v62 = vpop.xlane.xlu1 %1038  ;;  %1106 = vadd.xlane.f32.xlu1 %v1848_v28 }
 0x58a   :  { %1857 = vpow2.f32 %v1082_v36  ;;  %v2609_v4 = vsub.f32 %v981_v51, %v1039_v62  ;;  %v1041_v44 = vpop.xlane.xlu0 %1040 }
 0x58b   :  { %v2611_v35 = vsub.f32 %v986_v53, %v1041_v44  ;;  %1859 = vpow2.f32 %v1084_v37 }
 0x58c   :  { %v1850_v46 = vpop.eup %1849  ;;  %v1086_v15 = vmul.f32 1.442695, %v2609_v4 }
 0x58d   :  { %v1852_v23 = vpop.eup %1851  ;;  %v1088_v43 = vmul.f32 1.442695, %v2611_v35  ;;  %v1043_v26 = vpop.xlane.xlu1 %1042  ;;  %1104 = vadd.xlane.f32.xlu0 %v1850_v46 }
 0x58e   :  { %1861 = vpow2.f32 %v1086_v15  ;;  %v2615_v6 = vsub.f32 %v991_v55, %v1043_v26  ;;  %1110 = vadd.xlane.f32.xlu1 %v1852_v23  ;;  %v1045_v5 = vpop.xlane.xlu0 %1044 }
 0x58f   :  { %v2617_v63 = vsub.f32 %v996_v57, %v1045_v5  ;;  %1863 = vpow2.f32 %v1088_v43 }
 0x590   :  { %v1854_v13 = vpop.eup %1853  ;;  %v1090_v61 = vmul.f32 1.442695, %v2615_v6 }
 0x591   :  { %v1092_v29 = vmul.f32 1.442695, %v2617_v63  ;;  %v1047_v32 = vpop.xlane.xlu1 %1046  ;;  %1108 = vadd.xlane.f32.xlu0 %v1854_v13  ;;  %v1856_v16 = vpop.eup %1855 }
 0x592   :  { %1865 = vpow2.f32 %v1090_v61  ;;  %v2622_v34 = vsub.f32 %v2573_v59, %v1047_v32  ;;  %v1049_v24 = vpop.xlane.xlu0 %1048 }
 0x593   :  { %v2625_v17 = vsub.f32 %v2575_v3, %v1049_v24  ;;  %1867 = vpow2.f32 %v1092_v29 }
 0x594   :  { %v1858_v14 = vpop.eup %1857  ;;  %v1094_v45 = vmul.f32 1.442695, %v2622_v34 }
 0x595   :  { %v1096_v47 = vmul.f32 1.442695, %v2625_v17  ;;  %v1051_v48 = vpop.xlane.xlu1 %1050  ;;  %1114 = vadd.xlane.f32.xlu1 %v1858_v14  ;;  %1112 = vadd.xlane.f32.xlu0 %v1856_v16  ;;  %v1860_v51 = vpop.eup %1859 }
 0x596   :  { %1869 = vpow2.f32 %v1094_v45  ;;  %v2630_v49 = vsub.f32 %v2579_v27, %v1051_v48  ;;  %v1053_v50 = vpop.xlane.xlu0 %1052 }
 0x597   :  { %v2633_v52 = vsub.f32 %v2581_v42, %v1053_v50  ;;  %1871 = vpow2.f32 %v1096_v47 }
 0x598   :  { %v1862_v53 = vpop.eup %1861  ;;  %v1098_v54 = vmul.f32 1.442695, %v2630_v49 }
 0x599   :  { %v1100_v55 = vmul.f32 1.442695, %v2633_v52  ;;  %1118 = vadd.xlane.f32.xlu1 %v1862_v53  ;;  %v1055_v56 = vpop.xlane.xlu1 %1054  ;;  %1116 = vadd.xlane.f32.xlu0 %v1860_v51  ;;  %v1864_v58 = vpop.eup %1863 }
 0x59a   :  { %1873 = vpow2.f32 %v1098_v54  ;;  %v2638_v57 = vsub.f32 %v2585_v11, %v1055_v56 }
 0x59b   :  { %1875 = vpow2.f32 %v1100_v55 }
 0x59c   :  { %v1866_v59 = vpop.eup %1865  ;;  %v1102_v60 = vmul.f32 1.442695, %v2638_v57 }
 0x59d   :  { %1122 = vadd.xlane.f32.xlu1 %v1866_v59  ;;  %1120 = vadd.xlane.f32.xlu0 %v1864_v58  ;;  %v1868_v3 = vpop.eup %1867 }
 0x59e   :  { %1877 = vpow2.f32 %v1102_v60 }
 0x5a0   :  { %v1870_v21 = vpop.eup %1869 }
 0x5a1   :  { %1126 = vadd.xlane.f32.xlu1 %v1870_v21  ;;  %1124 = vadd.xlane.f32.xlu0 %v1868_v3  ;;  %v1872_v27 = vpop.eup %1871 }
 0x5a4   :  { %v1874_v38 = vpop.eup %1873 }
 0x5a5   :  { %1130 = vadd.xlane.f32.xlu1 %v1874_v38  ;;  %1128 = vadd.xlane.f32.xlu0 %v1872_v27  ;;  %v1876_v42 = vpop.eup %1875 }
 0x5a8   :  { %v1878_v12 = vpop.eup %1877 }
 0x5a9   :  { %1134 = vadd.xlane.f32.xlu1 %v1878_v12  ;;  %1132 = vadd.xlane.f32.xlu0 %v1876_v42 }
 0x616   :  { %v1107_v11 = vpop.xlane.xlu1 %1106 }
 0x617   :  { %1879 = vlog2.f32 %v1107_v11 }
 0x61a   :  { %v1105_v25 = vpop.xlane.xlu0 %1104 }
 0x61b   :  { %v1111_v41 = vpop.xlane.xlu1 %1110  ;;  %1881 = vlog2.f32 %v1105_v25 }
 0x61c   :  { %1883 = vlog2.f32 %v1111_v41 }
 0x61e   :  { %v1109_v7 = vpop.xlane.xlu0 %1108 }
 0x61f   :  { %1885 = vlog2.f32 %v1109_v7 }
 0x621   :  { %v1880_v8 = vpop.eup %1879 }
 0x622   :  { %v1139_v31 = vmul.f32 0.6931472, %v1880_v8  ;;  %v1115_v1 = vpop.xlane.xlu1 %1114  ;;  %v1113_v22 = vpop.xlane.xlu0 %1112 }
 0x623   :  { %1887 = vlog2.f32 %v1115_v1 }
 0x624   :  { %v1169_v9 = vsub.f32 %v2588_v19, %v1139_v31  ;;  %1889 = vlog2.f32 %v1113_v22 }
 0x625   :  { %v1882_v10 = vpop.eup %1881 }
 0x626   :  { %v1884_v18 = vpop.eup %1883  ;;  %1185 = vst [vmem:[#allocation10 + $0x8] sm:$0xff] %v1169_v9  ;;  %v1137_v0 = vmul.f32 0.6931472, %v1882_v10  ;;  %v1119_v28 = vpop.xlane.xlu1 %1118 }
 0x627   :  { %v1117_v36 = vpop.xlane.xlu0 %1116  ;;  %v1143_v37 = vmul.f32 0.6931472, %v1884_v18  ;;  %1891 = vlog2.f32 %v1119_v28 }
 0x628   :  { %v1168_v62 = vsub.f32 %v2591_v30, %v1137_v0  ;;  %1893 = vlog2.f32 %v1117_v36 }
 0x629   :  { %v1886_v44 = vpop.eup %1885  ;;  %v1171_v46 = vsub.f32 %v2593_v20, %v1143_v37 }
 0x62a   :  { %1184 = vst [vmem:[#allocation10] sm:$0xff] %v1168_v62  ;;  %v1141_v15 = vmul.f32 0.6931472, %v1886_v44  ;;  %v1123_v23 = vpop.xlane.xlu1 %1122 }
 0x62b   :  { %v1121_v43 = vpop.xlane.xlu0 %1120  ;;  %1187 = vst [vmem:[#allocation10 + $0x18] sm:$0xff] %v1171_v46  ;;  %1895 = vlog2.f32 %v1123_v23 }
 0x62c   :  { %v1170_v19 = vsub.f32 %v2597_v33, %v1141_v15  ;;  %1897 = vlog2.f32 %v1121_v43 }
 0x62d   :  { %v1888_v26 = vpop.eup %1887 }
 0x62e   :  { %v1890_v5 = vpop.eup %1889  ;;  %1186 = vst [vmem:[#allocation10 + $0x10] sm:$0xff] %v1170_v19  ;;  %v1147_v13 = vmul.f32 0.6931472, %v1888_v26  ;;  %v1127_v61 = vpop.xlane.xlu1 %1126 }
 0x62f   :  { %v1125_v29 = vpop.xlane.xlu0 %1124  ;;  %v1145_v30 = vmul.f32 0.6931472, %v1890_v5  ;;  %1899 = vlog2.f32 %v1127_v61 }
 0x630   :  { %v1173_v32 = vsub.f32 %v2603_v39, %v1147_v13  ;;  %1901 = vlog2.f32 %v1125_v29 }
 0x631   :  { %v1892_v20 = vpop.eup %1891  ;;  %v1172_v24 = vsub.f32 %v2599_v2, %v1145_v30 }
 0x632   :  { %v1894_v16 = vpop.eup %1893  ;;  %1189 = vst [vmem:[#allocation10 + $0x28] sm:$0xff] %v1173_v32  ;;  %v1151_v14 = vmul.f32 0.6931472, %v1892_v20  ;;  %v1131_v45 = vpop.xlane.xlu1 %1130 }
 0x633   :  { %v1129_v33 = vpop.xlane.xlu0 %1128  ;;  %1188 = vst [vmem:[#allocation10 + $0x20] sm:$0xff] %v1172_v24  ;;  %v1149_v47 = vmul.f32 0.6931472, %v1894_v16  ;;  %1903 = vlog2.f32 %v1131_v45 }
 0x634   :  { %v1175_v48 = vsub.f32 %v2609_v4, %v1151_v14  ;;  %1905 = vlog2.f32 %v1129_v33 }
 0x635   :  { %v1896_v50 = vpop.eup %1895  ;;  %v1174_v51 = vsub.f32 %v2605_v40, %v1149_v47 }
 0x636   :  { %v1898_v53 = vpop.eup %1897  ;;  %1191 = vst [vmem:[#allocation10 + $0x38] sm:$0xff] %v1175_v48  ;;  %v1155_v39 = vmul.f32 0.6931472, %v1896_v50  ;;  %v1135_v54 = vpop.xlane.xlu1 %1134 }
 0x637   :  { %v1133_v55 = vpop.xlane.xlu0 %1132  ;;  %1190 = vst [vmem:[#allocation10 + $0x30] sm:$0xff] %v1174_v51  ;;  %v1153_v2 = vmul.f32 0.6931472, %v1898_v53  ;;  %1907 = vlog2.f32 %v1135_v54 }
 0x638   :  { %v1177_v56 = vsub.f32 %v2615_v6, %v1155_v39  ;;  %1909 = vlog2.f32 %v1133_v55 }
 0x639   :  { %v1900_v58 = vpop.eup %1899  ;;  %v1176_v59 = vsub.f32 %v2611_v35, %v1153_v2 }
 0x63a   :  { %v1902_v60 = vpop.eup %1901  ;;  %1193 = vst [vmem:[#allocation10 + $0x48] sm:$0xff] %v1177_v56  ;;  %v1159_v4 = vmul.f32 0.6931472, %v1900_v58 }
 0x63b   :  { %1192 = vst [vmem:[#allocation10 + $0x40] sm:$0xff] %v1176_v59  ;;  %v1157_v3 = vmul.f32 0.6931472, %v1902_v60 }
 0x63c   :  { %v1179_v40 = vsub.f32 %v2622_v34, %v1159_v4 }
 0x63d   :  { %v1904_v21 = vpop.eup %1903  ;;  %v1178_v27 = vsub.f32 %v2617_v63, %v1157_v3 }
 0x63e   :  { %v1906_v38 = vpop.eup %1905  ;;  %1195 = vst [vmem:[#allocation10 + $0x58] sm:$0xff] %v1179_v40  ;;  %v1163_v42 = vmul.f32 0.6931472, %v1904_v21 }
 0x63f   :  { %1194 = vst [vmem:[#allocation10 + $0x50] sm:$0xff] %v1178_v27  ;;  %v1161_v12 = vmul.f32 0.6931472, %v1906_v38 }
 0x640   :  { %v1181_v6 = vsub.f32 %v2630_v49, %v1163_v42 }
 0x641   :  { %v1908_v11 = vpop.eup %1907  ;;  %v1180_v35 = vsub.f32 %v2625_v17, %v1161_v12 }
 0x642   :  { %v1910_v25 = vpop.eup %1909  ;;  %1197 = vst [vmem:[#allocation10 + $0x68] sm:$0xff] %v1181_v6  ;;  %v1167_v41 = vmul.f32 0.6931472, %v1908_v11 }
 0x643   :  { %1196 = vst [vmem:[#allocation10 + $0x60] sm:$0xff] %v1180_v35  ;;  %v1165_v34 = vmul.f32 0.6931472, %v1910_v25 }
 0x644   :  { %v1183_v7 = vsub.f32 %v2638_v57, %v1167_v41 }
 0x645   :  { %v1182_v63 = vsub.f32 %v2633_v52, %v1165_v34 }
 0x646   :  { %1199 = vst [vmem:[#allocation10 + $0x78] sm:$0xff] %v1183_v7 }
 0x647   :  { %1198 = vst [vmem:[#allocation10 + $0x70] sm:$0xff] %v1182_v63 }
 0x648   :  { %2010 = shalt.err (!%p2007_p8)
}
 0x649   :  { %s2011_s0 = scalar_lea.hbm %s2681_s9, 2048 }
 0x64a   :  { %p2012_p9 = scmp.ne.s32.totalorder %s2681_s9, %s2011_s0  ;;  %p2015_p10 = scmp.lt.u32.totalorder %s2011_s0, %s2681_s9 }
 0x64c   :  { %p2017_p11 = pnand %p2015_p10, %p2012_p9 }
 0x64e   :  { %2020 = shalt.err (!%p2017_p11)
}
 0x64f   :  { %1211 = dma.vmem_to_hbm [thread:$0]  %s1206_s23, 2048, %s2681_s9, [#allocation4], %s2031_s21, %s2031_s21, %s2032_s22  }
 0x650   :  { %2027 = dma.done.wait [#allocation4], 2048  }
 0x651   :  { %2028 = vsyncadd [#allocation4], 4294965248 }
 0x652   :  { %1215 = vsyncpa [#allocation3], 1 }
 0x653   :  { %1216 = vsyncpa [#allocation6], 1 }
 0x654   :  { %1217 = vsyncpa [#allocation9], 1 }
 0x655   :  { %1218 = vsyncpa [#allocation4], 1 }

</bundles_post_ra>
